<compile_context>
chip_gen: v7x
topology: tpu7x:2x2x1
jax: 0.10.0
libtpu: 0.0.40
codegen_flags: <defaults>
</compile_context>

<pallas_src>
import jax
import jax.numpy as jnp
from jax.experimental import pallas as pl
from jax.experimental.pallas import tpu as pltpu


# ----------------------------------------------------------------------------- kernel
def ar_kernel(x_ref, w_ref, b_ref, o_ref):
    """One batch tile of: out[b, m] = sum_w W[w] * x[b, w, m] + bias.

    x_ref: (TB, window, Mp)  VMEM, native input dtype (f32 or bf16)
    w_ref: (window,)         SMEM f32 (nn.Linear(window, 1).weight, flattened)
    b_ref: (1,)              SMEM f32 (nn.Linear(window, 1).bias)
    o_ref: (TB, Mp)          VMEM f32 (lane-dense; wrapper reshapes to (B, 1, M))
    """
    window = x_ref.shape[1]
    # Unrolled weighted accumulation over the window axis, entirely on the VPU,
    # with scalar weights read from SMEM. Upcast to f32 happens per-slice so the
    # HBM traffic stays in the input's native dtype.
    acc = x_ref[:, 0, :].astype(jnp.float32) * w_ref[0]
    for k in range(1, window):
        acc = acc + x_ref[:, k, :].astype(jnp.float32) * w_ref[k]
    o_ref[...] = acc + b_ref[0]


# ----------------------------------------------------------------------------- wrapper
def _round_up(x, m):
    return (x + m - 1) // m * m


@jax.jit
def ar_forward(x, weight, bias):
    """x: (B, window, n_multiv); weight: (1, window); bias: (1,) -> (B, 1, n_multiv)."""
    B, window, n_multiv = x.shape

    # Lane-pad the multivariate dim to a multiple of 128 (unmasked full-lane stores).
    Mp = _round_up(n_multiv, 128)

    # Batch tile: target ~2 MiB per input block (double-buffered -> ~4 MiB, safe
    # within the default scoped-VMEM limit on v5e/v6e/v7x), rows a multiple of 8.
    row_bytes = window * Mp * x.dtype.itemsize
    TB = max(8, ((2 * 1024 * 1024) // row_bytes) // 8 * 8)
    TB = min(TB, _round_up(B, 8))
    B_pad = _round_up(B, TB)

    if (Mp != n_multiv) or (B_pad != B):
        x = jnp.pad(x, ((0, B_pad - B), (0, 0), (0, Mp - n_multiv)))

    w_flat = weight.reshape(window).astype(jnp.float32)
    b_flat = bias.reshape(1).astype(jnp.float32)

    y = pl.pallas_call(
        ar_kernel,
        out_shape=jax.ShapeDtypeStruct((B_pad, Mp), jnp.float32),
        grid=(B_pad // TB,),
        in_specs=[
            pl.BlockSpec((TB, window, Mp), lambda i: (i, 0, 0)),        # x batch tile
            pl.BlockSpec(memory_space=pltpu.MemorySpace.SMEM),          # weight (resident)
            pl.BlockSpec(memory_space=pltpu.MemorySpace.SMEM),          # bias (resident)
        ],
        out_specs=pl.BlockSpec((TB, Mp), lambda i: (i, 0)),
        compiler_params=pltpu.CompilerParams(
            dimension_semantics=("parallel",)),                          # 2 TCs on v7x
    )(x, w_flat, b_flat)

    # Strip padding, restore torch output layout (B, 1, n_multiv).
    return y[:B, :n_multiv].reshape(B, 1, n_multiv)


# ----------------------------------------------------------------------------- main
if __name__ == "__main__":
    # Small shapes consistent with the module: batch=2, window=16, n_multiv=128.
    B, window, n_multiv = 2, 16, 128

    key = jax.random.PRNGKey(0)
    kx, kw, kb = jax.random.split(key, 3)
    x = jax.random.normal(kx, (B, window, n_multiv), dtype=jnp.float32)
    weight = (0.1 * jax.random.normal(kw, (1, window))).astype(jnp.float32)  # nn.Linear(window,1).weight
    bias = (0.1 * jax.random.normal(kb, (1,))).astype(jnp.float32)           # nn.Linear(window,1).bias

    out = ar_forward(x, weight, bias)
    out = jax.block_until_ready(out)
    assert out.shape == (B, 1, n_multiv), out.shape

    # Pure-JAX reference of the PyTorch forward (transpose -> linear -> transpose).
    ref = (jnp.einsum("bwm,w->bm", x, weight[0]) + bias[0]).reshape(B, 1, n_multiv)
    assert bool(jnp.all(jnp.isfinite(out)))
    assert jnp.allclose(out, ref, atol=1e-5, rtol=1e-5), float(jnp.max(jnp.abs(out - ref)))

    print("KERNEL_OK")
</pallas_src>

<mosaic_0001>
module attributes {stable_mosaic.version = 11 : i64} {
  func.func @ar_kernel(%arg0: i32, %arg1: memref<8x16x128xf32, #tpu.memory_space<vmem>>, %arg2: memref<16xf32, #tpu.memory_space<smem>>, %arg3: memref<1xf32, #tpu.memory_space<smem>>, %arg4: memref<8x128xf32, #tpu.memory_space<vmem>>) attributes {dimension_semantics = [#tpu.dimension_semantics<parallel>], iteration_bounds = array<i64: 1>, scalar_prefetch = 0 : i64, scratch_operands = 0 : i64, tpu.core_type = #tpu.core_type<tc>, window_params = [{transform_indices = @transform_0, window_bounds = array<i64: 8, 16, 128>}, {transform_indices = @transform_1, window_bounds = array<i64: 16>}, {transform_indices = @transform_2, window_bounds = array<i64: 1>}, {transform_indices = @transform_3, window_bounds = array<i64: 8, 128>}]} {
    %c0 = arith.constant 0 : index
    %c0_0 = arith.constant 0 : index
    %c0_1 = arith.constant 0 : index
    %0 = vector.load %arg1[%c0, %c0_0, %c0_1] : memref<8x16x128xf32, #tpu.memory_space<vmem>>, vector<8x1x128xf32>
    %1 = vector.shape_cast %0 : vector<8x1x128xf32> to vector<8x128xf32>
    %c0_2 = arith.constant 0 : index
    %2 = memref.load %arg2[%c0_2] : memref<16xf32, #tpu.memory_space<smem>>
    %3 = vector.broadcast %2 : f32 to vector<8x128xf32>
    %4 = arith.mulf %1, %3 : vector<8x128xf32>
    %c0_3 = arith.constant 0 : index
    %c1 = arith.constant 1 : index
    %c0_4 = arith.constant 0 : index
    %5 = vector.load %arg1[%c0_3, %c1, %c0_4] : memref<8x16x128xf32, #tpu.memory_space<vmem>>, vector<8x1x128xf32>
    %6 = vector.shape_cast %5 : vector<8x1x128xf32> to vector<8x128xf32>
    %c1_5 = arith.constant 1 : index
    %7 = memref.load %arg2[%c1_5] : memref<16xf32, #tpu.memory_space<smem>>
    %8 = vector.broadcast %7 : f32 to vector<8x128xf32>
    %9 = arith.mulf %6, %8 : vector<8x128xf32>
    %10 = arith.addf %4, %9 : vector<8x128xf32>
    %c0_6 = arith.constant 0 : index
    %c2 = arith.constant 2 : index
    %c0_7 = arith.constant 0 : index
    %11 = vector.load %arg1[%c0_6, %c2, %c0_7] : memref<8x16x128xf32, #tpu.memory_space<vmem>>, vector<8x1x128xf32>
    %12 = vector.shape_cast %11 : vector<8x1x128xf32> to vector<8x128xf32>
    %c2_8 = arith.constant 2 : index
    %13 = memref.load %arg2[%c2_8] : memref<16xf32, #tpu.memory_space<smem>>
    %14 = vector.broadcast %13 : f32 to vector<8x128xf32>
    %15 = arith.mulf %12, %14 : vector<8x128xf32>
    %16 = arith.addf %10, %15 : vector<8x128xf32>
    %c0_9 = arith.constant 0 : index
    %c3 = arith.constant 3 : index
    %c0_10 = arith.constant 0 : index
    %17 = vector.load %arg1[%c0_9, %c3, %c0_10] : memref<8x16x128xf32, #tpu.memory_space<vmem>>, vector<8x1x128xf32>
    %18 = vector.shape_cast %17 : vector<8x1x128xf32> to vector<8x128xf32>
    %c3_11 = arith.constant 3 : index
    %19 = memref.load %arg2[%c3_11] : memref<16xf32, #tpu.memory_space<smem>>
    %20 = vector.broadcast %19 : f32 to vector<8x128xf32>
    %21 = arith.mulf %18, %20 : vector<8x128xf32>
    %22 = arith.addf %16, %21 : vector<8x128xf32>
    %c0_12 = arith.constant 0 : index
    %c4 = arith.constant 4 : index
    %c0_13 = arith.constant 0 : index
    %23 = vector.load %arg1[%c0_12, %c4, %c0_13] : memref<8x16x128xf32, #tpu.memory_space<vmem>>, vector<8x1x128xf32>
    %24 = vector.shape_cast %23 : vector<8x1x128xf32> to vector<8x128xf32>
    %c4_14 = arith.constant 4 : index
    %25 = memref.load %arg2[%c4_14] : memref<16xf32, #tpu.memory_space<smem>>
    %26 = vector.broadcast %25 : f32 to vector<8x128xf32>
    %27 = arith.mulf %24, %26 : vector<8x128xf32>
    %28 = arith.addf %22, %27 : vector<8x128xf32>
    %c0_15 = arith.constant 0 : index
    %c5 = arith.constant 5 : index
    %c0_16 = arith.constant 0 : index
    %29 = vector.load %arg1[%c0_15, %c5, %c0_16] : memref<8x16x128xf32, #tpu.memory_space<vmem>>, vector<8x1x128xf32>
    %30 = vector.shape_cast %29 : vector<8x1x128xf32> to vector<8x128xf32>
    %c5_17 = arith.constant 5 : index
    %31 = memref.load %arg2[%c5_17] : memref<16xf32, #tpu.memory_space<smem>>
    %32 = vector.broadcast %31 : f32 to vector<8x128xf32>
    %33 = arith.mulf %30, %32 : vector<8x128xf32>
    %34 = arith.addf %28, %33 : vector<8x128xf32>
    %c0_18 = arith.constant 0 : index
    %c6 = arith.constant 6 : index
    %c0_19 = arith.constant 0 : index
    %35 = vector.load %arg1[%c0_18, %c6, %c0_19] : memref<8x16x128xf32, #tpu.memory_space<vmem>>, vector<8x1x128xf32>
    %36 = vector.shape_cast %35 : vector<8x1x128xf32> to vector<8x128xf32>
    %c6_20 = arith.constant 6 : index
    %37 = memref.load %arg2[%c6_20] : memref<16xf32, #tpu.memory_space<smem>>
    %38 = vector.broadcast %37 : f32 to vector<8x128xf32>
    %39 = arith.mulf %36, %38 : vector<8x128xf32>
    %40 = arith.addf %34, %39 : vector<8x128xf32>
    %c0_21 = arith.constant 0 : index
    %c7 = arith.constant 7 : index
    %c0_22 = arith.constant 0 : index
    %41 = vector.load %arg1[%c0_21, %c7, %c0_22] : memref<8x16x128xf32, #tpu.memory_space<vmem>>, vector<8x1x128xf32>
    %42 = vector.shape_cast %41 : vector<8x1x128xf32> to vector<8x128xf32>
    %c7_23 = arith.constant 7 : index
    %43 = memref.load %arg2[%c7_23] : memref<16xf32, #tpu.memory_space<smem>>
    %44 = vector.broadcast %43 : f32 to vector<8x128xf32>
    %45 = arith.mulf %42, %44 : vector<8x128xf32>
    %46 = arith.addf %40, %45 : vector<8x128xf32>
    %c0_24 = arith.constant 0 : index
    %c8 = arith.constant 8 : index
    %c0_25 = arith.constant 0 : index
    %47 = vector.load %arg1[%c0_24, %c8, %c0_25] : memref<8x16x128xf32, #tpu.memory_space<vmem>>, vector<8x1x128xf32>
    %48 = vector.shape_cast %47 : vector<8x1x128xf32> to vector<8x128xf32>
    %c8_26 = arith.constant 8 : index
    %49 = memref.load %arg2[%c8_26] : memref<16xf32, #tpu.memory_space<smem>>
    %50 = vector.broadcast %49 : f32 to vector<8x128xf32>
    %51 = arith.mulf %48, %50 : vector<8x128xf32>
    %52 = arith.addf %46, %51 : vector<8x128xf32>
    %c0_27 = arith.constant 0 : index
    %c9 = arith.constant 9 : index
    %c0_28 = arith.constant 0 : index
    %53 = vector.load %arg1[%c0_27, %c9, %c0_28] : memref<8x16x128xf32, #tpu.memory_space<vmem>>, vector<8x1x128xf32>
    %54 = vector.shape_cast %53 : vector<8x1x128xf32> to vector<8x128xf32>
    %c9_29 = arith.constant 9 : index
    %55 = memref.load %arg2[%c9_29] : memref<16xf32, #tpu.memory_space<smem>>
    %56 = vector.broadcast %55 : f32 to vector<8x128xf32>
    %57 = arith.mulf %54, %56 : vector<8x128xf32>
    %58 = arith.addf %52, %57 : vector<8x128xf32>
    %c0_30 = arith.constant 0 : index
    %c10 = arith.constant 10 : index
    %c0_31 = arith.constant 0 : index
    %59 = vector.load %arg1[%c0_30, %c10, %c0_31] : memref<8x16x128xf32, #tpu.memory_space<vmem>>, vector<8x1x128xf32>
    %60 = vector.shape_cast %59 : vector<8x1x128xf32> to vector<8x128xf32>
    %c10_32 = arith.constant 10 : index
    %61 = memref.load %arg2[%c10_32] : memref<16xf32, #tpu.memory_space<smem>>
    %62 = vector.broadcast %61 : f32 to vector<8x128xf32>
    %63 = arith.mulf %60, %62 : vector<8x128xf32>
    %64 = arith.addf %58, %63 : vector<8x128xf32>
    %c0_33 = arith.constant 0 : index
    %c11 = arith.constant 11 : index
    %c0_34 = arith.constant 0 : index
    %65 = vector.load %arg1[%c0_33, %c11, %c0_34] : memref<8x16x128xf32, #tpu.memory_space<vmem>>, vector<8x1x128xf32>
    %66 = vector.shape_cast %65 : vector<8x1x128xf32> to vector<8x128xf32>
    %c11_35 = arith.constant 11 : index
    %67 = memref.load %arg2[%c11_35] : memref<16xf32, #tpu.memory_space<smem>>
    %68 = vector.broadcast %67 : f32 to vector<8x128xf32>
    %69 = arith.mulf %66, %68 : vector<8x128xf32>
    %70 = arith.addf %64, %69 : vector<8x128xf32>
    %c0_36 = arith.constant 0 : index
    %c12 = arith.constant 12 : index
    %c0_37 = arith.constant 0 : index
    %71 = vector.load %arg1[%c0_36, %c12, %c0_37] : memref<8x16x128xf32, #tpu.memory_space<vmem>>, vector<8x1x128xf32>
    %72 = vector.shape_cast %71 : vector<8x1x128xf32> to vector<8x128xf32>
    %c12_38 = arith.constant 12 : index
    %73 = memref.load %arg2[%c12_38] : memref<16xf32, #tpu.memory_space<smem>>
    %74 = vector.broadcast %73 : f32 to vector<8x128xf32>
    %75 = arith.mulf %72, %74 : vector<8x128xf32>
    %76 = arith.addf %70, %75 : vector<8x128xf32>
    %c0_39 = arith.constant 0 : index
    %c13 = arith.constant 13 : index
    %c0_40 = arith.constant 0 : index
    %77 = vector.load %arg1[%c0_39, %c13, %c0_40] : memref<8x16x128xf32, #tpu.memory_space<vmem>>, vector<8x1x128xf32>
    %78 = vector.shape_cast %77 : vector<8x1x128xf32> to vector<8x128xf32>
    %c13_41 = arith.constant 13 : index
    %79 = memref.load %arg2[%c13_41] : memref<16xf32, #tpu.memory_space<smem>>
    %80 = vector.broadcast %79 : f32 to vector<8x128xf32>
    %81 = arith.mulf %78, %80 : vector<8x128xf32>
    %82 = arith.addf %76, %81 : vector<8x128xf32>
    %c0_42 = arith.constant 0 : index
    %c14 = arith.constant 14 : index
    %c0_43 = arith.constant 0 : index
    %83 = vector.load %arg1[%c0_42, %c14, %c0_43] : memref<8x16x128xf32, #tpu.memory_space<vmem>>, vector<8x1x128xf32>
    %84 = vector.shape_cast %83 : vector<8x1x128xf32> to vector<8x128xf32>
    %c14_44 = arith.constant 14 : index
    %85 = memref.load %arg2[%c14_44] : memref<16xf32, #tpu.memory_space<smem>>
    %86 = vector.broadcast %85 : f32 to vector<8x128xf32>
    %87 = arith.mulf %84, %86 : vector<8x128xf32>
    %88 = arith.addf %82, %87 : vector<8x128xf32>
    %c0_45 = arith.constant 0 : index
    %c15 = arith.constant 15 : index
    %c0_46 = arith.constant 0 : index
    %89 = vector.load %arg1[%c0_45, %c15, %c0_46] : memref<8x16x128xf32, #tpu.memory_space<vmem>>, vector<8x1x128xf32>
    %90 = vector.shape_cast %89 : vector<8x1x128xf32> to vector<8x128xf32>
    %c15_47 = arith.constant 15 : index
    %91 = memref.load %arg2[%c15_47] : memref<16xf32, #tpu.memory_space<smem>>
    %92 = vector.broadcast %91 : f32 to vector<8x128xf32>
    %93 = arith.mulf %90, %92 : vector<8x128xf32>
    %94 = arith.addf %88, %93 : vector<8x128xf32>
    %c0_48 = arith.constant 0 : index
    %95 = memref.load %arg3[%c0_48] : memref<1xf32, #tpu.memory_space<smem>>
    %96 = vector.broadcast %95 : f32 to vector<8x128xf32>
    %97 = arith.addf %94, %96 : vector<8x128xf32>
    %c0_49 = arith.constant 0 : index
    %c0_50 = arith.constant 0 : index
    %98 = vector.load %arg4[%c0_49, %c0_50] : memref<8x128xf32, #tpu.memory_space<vmem>>, vector<8x128xf32>
    tpu.vector_store %arg4[%c0_49, %c0_50], %97 {strides = array<i32>} : memref<8x128xf32, #tpu.memory_space<vmem>>, vector<8x128xf32>,
    return
  }
  func.func @transform_0(%arg0: i32) -> (i32, i32, i32) {
    %c0_i32 = arith.constant 0 : i32
    %c0_i32_0 = arith.constant 0 : i32
    %c0_i32_1 = arith.constant 0 : i32
    return %arg0, %c0_i32, %c0_i32_0 : i32, i32, i32
  }
  func.func @transform_1(%arg0: i32) -> i32 {
    %c0_i32 = arith.constant 0 : i32
    %c0_i32_0 = arith.constant 0 : i32
    return %c0_i32 : i32
  }
  func.func @transform_2(%arg0: i32) -> i32 {
    %c0_i32 = arith.constant 0 : i32
    %c0_i32_0 = arith.constant 0 : i32
    return %c0_i32 : i32
  }
  func.func @transform_3(%arg0: i32) -> (i32, i32) {
    %c0_i32 = arith.constant 0 : i32
    %c0_i32_0 = arith.constant 0 : i32
    return %arg0, %c0_i32 : i32, i32
  }
}

</mosaic_0001>

<bundles_post_ra>
// kernel: ar_forward.1
= control target key start
LH: loop header
LB: loop body
LE: loop exit
PB: predicated region body
PF: predicated region fallthrough
CT: control target
= control target key end

     0   :  { %9 = vsyncpa [#allocation4], 0  ;;  %s1008_s0 = inlined_call_operand.vmem [shape: f32[8,16,128], index: 0, kind: input, shape index: {}]   ;;  %s1009_s1 = inlined_call_operand.vmem [shape: f32[16], index: 1, kind: input, shape index: {}]   ;;  %s1010_s2 = inlined_call_operand.<no memory space> [shape: f32[1], index: 2, kind: input, shape index: {}]   ;;  %s1011_s3 = inlined_call_operand.vmem [shape: f32[8,128], index: 3, kind: output, shape index: {}]  }
   0x1   :  { %s18_s14 = sshll.u32 %s1009_s1, 4  ;;  %s19_s14 = int_to_ptr.vmem [resolvable:$true] %s18_s14 }
   0x2   :  { %s498_s15 = scalar_lea.vmem %s19_s14, 16  ;;  %p503_p1 = scmp.lt.s32.totalorder %s19_s14, %s19_s14 }
   0x3   :  { %p499_p0 = scmp.ne.s32.totalorder %s19_s14, %s498_s15  ;;  %p504_p2 = scmp.lt.s32.totalorder %s498_s15, %s498_s15 }
   0x5   :  { %p505_p3 = por %p504_p2, %p503_p1 }
   0x7   :  { %p506_p4 = pnand %p505_p3, %p499_p0 }
   0x9   :  { %509 = shalt.err (!%p506_p4)
}
   0xa   :  { %s512_s16 = smov [#allocation3]  }
   0xb   :  { %21 = dma.vmem_to_smem %s19_s14, 16, %s512_s16, [#allocation4]  }
   0xc   :  { %510 = dma.done.wait [#allocation4], 16  }
   0xd   :  { %511 = vsyncadd [#allocation4], 4294967280 }
   0xe   :  { %27 = sfence }
   0xf   :  { %s36_s17 = sld [smem:[#allocation3]]  ;;  %v28_v0 = vld [vmem:[%s1008_s0] sm:$0x1]  ;;  %v29_v1 = vld [vmem:[%s1008_s0 + $0x10] sm:$0x1]  ;;  %s482_s21 = sld [smem:[#allocation3 + $0x1]] }
  0x10   :  { %v30_v2 = vld [vmem:[%s1008_s0 + $0x20] sm:$0x1]  ;;  %v31_v3 = vld [vmem:[%s1008_s0 + $0x30] sm:$0x1]  ;;  %v46_v9 = vld [vmem:[%s1008_s0 + $0x1] sm:$0x1] }
  0x11   :  { %v32_v4 = vld [vmem:[%s1008_s0 + $0x40] sm:$0x1]  ;;  %v33_v5 = vld [vmem:[%s1008_s0 + $0x50] sm:$0x1]  ;;  %v47_v10 = vld [vmem:[%s1008_s0 + $0x11] sm:$0x1] }
  0x12   :  { %v34_v6 = vld [vmem:[%s1008_s0 + $0x60] sm:$0x1]  ;;  %v35_v7 = vld [vmem:[%s1008_s0 + $0x70] sm:$0x1]  ;;  %s566_s11 = sld [smem:[#allocation3 + $0x2]]  ;;  %s603_s7 = sld [smem:[#allocation3 + $0x4]] }
  0x13   :  { %v48_v12 = vld [vmem:[%s1008_s0 + $0x21] sm:$0x1]  ;;  %v49_v13 = vld [vmem:[%s1008_s0 + $0x31] sm:$0x1]  ;;  %v72_v30 = vld [vmem:[%s1008_s0 + $0x2] sm:$0x1] }
  0x14   :  { %v50_v14 = vld [vmem:[%s1008_s0 + $0x41] sm:$0x1]  ;;  %v51_v19 = vld [vmem:[%s1008_s0 + $0x51] sm:$0x1]  ;;  %v73_v35 = vld [vmem:[%s1008_s0 + $0x12] sm:$0x1] }
  0x15   :  { %v37_v8 = vstv %s36_s17  ;;  %v52_v20 = vld [vmem:[%s1008_s0 + $0x61] sm:$0x1]  ;;  %v53_v21 = vld [vmem:[%s1008_s0 + $0x71] sm:$0x1]  ;;  %v55_v25 = vstv %s482_s21  ;;  %s595_s21 = sld [smem:[#allocation3 + $0x3]]  ;;  %s644_s5 = sld [smem:[#allocation3 + $0x5]] }
  0x16   :  { %v38_v11 = vmul.f32 %v37_v8, %v28_v0  ;;  %v39_v15 = vmul.f32 %v37_v8, %v29_v1  ;;  %v40_v16 = vmul.f32 %v37_v8, %v30_v2  ;;  %v41_v17 = vmul.f32 %v37_v8, %v31_v3  ;;  %v74_v36 = vld [vmem:[%s1008_s0 + $0x22] sm:$0x1]  ;;  %v75_v38 = vld [vmem:[%s1008_s0 + $0x32] sm:$0x1]  ;;  %v98_v59 = vld [vmem:[%s1008_s0 + $0x3] sm:$0x1] }
  0x17   :  { %v42_v18 = vmul.f32 %v37_v8, %v32_v4  ;;  %v43_v22 = vmul.f32 %v37_v8, %v33_v5  ;;  %v44_v23 = vmul.f32 %v37_v8, %v34_v6  ;;  %v45_v24 = vmul.f32 %v37_v8, %v35_v7  ;;  %v76_v39 = vld [vmem:[%s1008_s0 + $0x42] sm:$0x1]  ;;  %v77_v44 = vld [vmem:[%s1008_s0 + $0x52] sm:$0x1]  ;;  %v99_v60 = vld [vmem:[%s1008_s0 + $0x13] sm:$0x1] }
  0x18   :  { %v56_v26 = vmul.f32 %v55_v25, %v46_v9  ;;  %v57_v27 = vmul.f32 %v55_v25, %v47_v10  ;;  %v58_v28 = vmul.f32 %v55_v25, %v48_v12  ;;  %v59_v29 = vmul.f32 %v55_v25, %v49_v13  ;;  %v78_v45 = vld [vmem:[%s1008_s0 + $0x62] sm:$0x1]  ;;  %v79_v46 = vld [vmem:[%s1008_s0 + $0x72] sm:$0x1]  ;;  %v100_v63 = vld [vmem:[%s1008_s0 + $0x23] sm:$0x1] }
  0x19   :  { %v60_v31 = vmul.f32 %v55_v25, %v50_v14  ;;  %v61_v32 = vmul.f32 %v55_v25, %v51_v19  ;;  %v62_v33 = vmul.f32 %v55_v25, %v52_v20  ;;  %v63_v34 = vmul.f32 %v55_v25, %v53_v21  ;;  %v101_v0 = vld [vmem:[%s1008_s0 + $0x33] sm:$0x1]  ;;  %v102_v1 = vld [vmem:[%s1008_s0 + $0x43] sm:$0x1]  ;;  %v124_v12 = vld [vmem:[%s1008_s0 + $0x4] sm:$0x1] }
  0x1a   :  { %v64_v37 = vadd.f32 %v56_v26, %v38_v11  ;;  %v65_v40 = vadd.f32 %v57_v27, %v39_v15  ;;  %v66_v41 = vadd.f32 %v58_v28, %v40_v16  ;;  %v67_v42 = vadd.f32 %v59_v29, %v41_v17  ;;  %v103_v6 = vld [vmem:[%s1008_s0 + $0x53] sm:$0x1]  ;;  %v104_v7 = vld [vmem:[%s1008_s0 + $0x63] sm:$0x1]  ;;  %s649_s9 = sld [smem:[#allocation3 + $0x6]]  ;;  %s651_s10 = sld [smem:[#allocation3 + $0x7]] }
  0x1b   :  { %v68_v43 = vadd.f32 %v60_v31, %v42_v18  ;;  %v69_v47 = vadd.f32 %v61_v32, %v43_v22  ;;  %v70_v48 = vadd.f32 %v62_v33, %v44_v23  ;;  %v71_v49 = vadd.f32 %v63_v34, %v45_v24  ;;  %v105_v8 = vld [vmem:[%s1008_s0 + $0x73] sm:$0x1]  ;;  %v125_v18 = vld [vmem:[%s1008_s0 + $0x14] sm:$0x1]  ;;  %v126_v23 = vld [vmem:[%s1008_s0 + $0x24] sm:$0x1] }
  0x1c   :  { %v81_v50 = vstv %s566_s11  ;;  %v107_v11 = vstv %s595_s21  ;;  %v133_v13 = vstv %s603_s7  ;;  %v127_v24 = vld [vmem:[%s1008_s0 + $0x34] sm:$0x1]  ;;  %s730_s28 = sld [smem:[#allocation3 + $0x8]]  ;;  %s732_s29 = sld [smem:[#allocation3 + $0x9]]  ;;  %vm455_vm0 = vcmask 1041409  }
  0x1d   :  { %v82_v51 = vmul.f32 %v81_v50, %v72_v30  ;;  %v83_v52 = vmul.f32 %v81_v50, %v73_v35  ;;  %v84_v53 = vmul.f32 %v81_v50, %v74_v36  ;;  %v85_v54 = vmul.f32 %v81_v50, %v75_v38  ;;  %v128_v25 = vld [vmem:[%s1008_s0 + $0x44] sm:$0x1]  ;;  %v129_v30 = vld [vmem:[%s1008_s0 + $0x54] sm:$0x1]  ;;  %s737_s6 = sld [smem:[#allocation3 + $0xa]]  ;;  %s739_s8 = sld [smem:[#allocation3 + $0xb]] }
  0x1e   :  { %v86_v55 = vmul.f32 %v81_v50, %v76_v39  ;;  %v87_v56 = vmul.f32 %v81_v50, %v77_v44  ;;  %v88_v57 = vmul.f32 %v81_v50, %v78_v45  ;;  %v89_v58 = vmul.f32 %v81_v50, %v79_v46  ;;  %v130_v31 = vld [vmem:[%s1008_s0 + $0x64] sm:$0x1]  ;;  %v131_v32 = vld [vmem:[%s1008_s0 + $0x74] sm:$0x1]  ;;  %v150_v45 = vld [vmem:[%s1008_s0 + $0x5] sm:$0x1] }
  0x1f   :  { %v90_v61 = vadd.f32 %v82_v51, %v64_v37  ;;  %v91_v62 = vadd.f32 %v83_v52, %v65_v40  ;;  %v92_v2 = vadd.f32 %v84_v53, %v66_v41  ;;  %v93_v3 = vadd.f32 %v85_v54, %v67_v42  ;;  %v151_v46 = vld [vmem:[%s1008_s0 + $0x15] sm:$0x1]  ;;  %v152_v50 = vld [vmem:[%s1008_s0 + $0x25] sm:$0x1]  ;;  %s853_s17 = sld [smem:[#allocation3 + $0xe]]  ;;  %s855_s18 = sld [smem:[#allocation3 + $0xf]] }
  0x20   :  { %v94_v4 = vadd.f32 %v86_v55, %v68_v43  ;;  %v95_v5 = vadd.f32 %v87_v56, %v69_v47  ;;  %v96_v9 = vadd.f32 %v88_v57, %v70_v48  ;;  %v97_v10 = vadd.f32 %v89_v58, %v71_v49  ;;  %v153_v51 = vld [vmem:[%s1008_s0 + $0x35] sm:$0x1]  ;;  %v154_v52 = vld [vmem:[%s1008_s0 + $0x45] sm:$0x1] }
  0x21   :  { %v108_v14 = vmul.f32 %v107_v11, %v98_v59  ;;  %v109_v15 = vmul.f32 %v107_v11, %v99_v60  ;;  %v110_v16 = vmul.f32 %v107_v11, %v100_v63  ;;  %v111_v17 = vmul.f32 %v107_v11, %v101_v0  ;;  %v155_v58 = vld [vmem:[%s1008_s0 + $0x55] sm:$0x1]  ;;  %v156_v59 = vld [vmem:[%s1008_s0 + $0x65] sm:$0x1] }
  0x22   :  { %v112_v19 = vmul.f32 %v107_v11, %v102_v1  ;;  %v113_v20 = vmul.f32 %v107_v11, %v103_v6  ;;  %v114_v21 = vmul.f32 %v107_v11, %v104_v7  ;;  %v115_v22 = vmul.f32 %v107_v11, %v105_v8  ;;  %v157_v60 = vld [vmem:[%s1008_s0 + $0x75] sm:$0x1]  ;;  %v177_v6 = vld [vmem:[%s1008_s0 + $0x16] sm:$0x1]  ;;  %v178_v11 = vld [vmem:[%s1008_s0 + $0x26] sm:$0x1] }
  0x23   :  { %v116_v26 = vadd.f32 %v108_v14, %v90_v61  ;;  %v117_v27 = vadd.f32 %v109_v15, %v91_v62  ;;  %v118_v28 = vadd.f32 %v110_v16, %v92_v2  ;;  %v119_v29 = vadd.f32 %v111_v17, %v93_v3 }
  0x24   :  { %v120_v33 = vadd.f32 %v112_v19, %v94_v4  ;;  %v121_v34 = vadd.f32 %v113_v20, %v95_v5  ;;  %v122_v35 = vadd.f32 %v114_v21, %v96_v9  ;;  %v123_v36 = vadd.f32 %v115_v22, %v97_v10  ;;  %v176_v5 = vld [vmem:[%s1008_s0 + $0x6] sm:$0x1]  ;;  %v183_v20 = vld [vmem:[%s1008_s0 + $0x76] sm:$0x1] }
  0x25   :  { %v134_v37 = vmul.f32 %v133_v13, %v124_v12  ;;  %v135_v38 = vmul.f32 %v133_v13, %v125_v18  ;;  %v136_v39 = vmul.f32 %v133_v13, %v126_v23  ;;  %v137_v40 = vmul.f32 %v133_v13, %v127_v24  ;;  %v179_v12 = vld [vmem:[%s1008_s0 + $0x36] sm:$0x1]  ;;  %v182_v19 = vld [vmem:[%s1008_s0 + $0x66] sm:$0x1] }
  0x26   :  { %v138_v41 = vmul.f32 %v133_v13, %v128_v25  ;;  %v139_v42 = vmul.f32 %v133_v13, %v129_v30  ;;  %v140_v43 = vmul.f32 %v133_v13, %v130_v31  ;;  %v141_v44 = vmul.f32 %v133_v13, %v131_v32  ;;  %v180_v13 = vld [vmem:[%s1008_s0 + $0x46] sm:$0x1]  ;;  %v181_v18 = vld [vmem:[%s1008_s0 + $0x56] sm:$0x1]  ;;  %v202_v25 = vld [vmem:[%s1008_s0 + $0x7] sm:$0x1] }
  0x27   :  { %v142_v47 = vadd.f32 %v134_v37, %v116_v26  ;;  %v143_v48 = vadd.f32 %v135_v38, %v117_v27  ;;  %v144_v49 = vadd.f32 %v136_v39, %v118_v28  ;;  %v689_v53 = vstv %s1010_s2  ;;  %v203_v30 = vld [vmem:[%s1008_s0 + $0x17] sm:$0x1]  ;;  %v206_v37 = vld [vmem:[%s1008_s0 + $0x47] sm:$0x1] }
  0x28   :  { %v145_v54 = vadd.f32 %v137_v40, %v119_v29  ;;  %v146_v55 = vadd.f32 %v138_v41, %v120_v33  ;;  %v147_v56 = vadd.f32 %v139_v42, %v121_v34  ;;  %v148_v57 = vadd.f32 %v140_v43, %v122_v35  ;;  %v204_v35 = vld [vmem:[%s1008_s0 + $0x27] sm:$0x1]  ;;  %v207_v42 = vld [vmem:[%s1008_s0 + $0x57] sm:$0x1] }
  0x29   :  { %v149_v61 = vadd.f32 %v141_v44, %v123_v36  ;;  %v159_v62 = vstv %s644_s5  ;;  %v185_v63 = vstv %s649_s9  ;;  %v211_v0 = vstv %s651_s10  ;;  %v205_v36 = vld [vmem:[%s1008_s0 + $0x37] sm:$0x1] }
  0x2a   :  { %v160_v1 = vmul.f32 %v159_v62, %v150_v45  ;;  %v161_v2 = vmul.f32 %v159_v62, %v151_v46  ;;  %v162_v3 = vmul.f32 %v159_v62, %v152_v50  ;;  %v163_v4 = vmul.f32 %v159_v62, %v153_v51  ;;  %v208_v43 = vld [vmem:[%s1008_s0 + $0x67] sm:$0x1]  ;;  %v209_v44 = vld [vmem:[%s1008_s0 + $0x77] sm:$0x1] }
  0x2b   :  { %v164_v7 = vmul.f32 %v159_v62, %v154_v52  ;;  %v165_v8 = vmul.f32 %v159_v62, %v155_v58  ;;  %v166_v9 = vmul.f32 %v159_v62, %v156_v59  ;;  %v167_v10 = vmul.f32 %v159_v62, %v157_v60  ;;  %v228_v58 = vld [vmem:[%s1008_s0 + $0x8] sm:$0x1]  ;;  %v229_v59 = vld [vmem:[%s1008_s0 + $0x18] sm:$0x1] }
  0x2c   :  { %v168_v14 = vadd.f32 %v160_v1, %v142_v47  ;;  %v169_v15 = vadd.f32 %v161_v2, %v143_v48  ;;  %v170_v16 = vadd.f32 %v162_v3, %v144_v49  ;;  %v171_v17 = vadd.f32 %v163_v4, %v145_v54  ;;  %v231_v1 = vld [vmem:[%s1008_s0 + $0x38] sm:$0x1]  ;;  %v232_v2 = vld [vmem:[%s1008_s0 + $0x48] sm:$0x1] }
  0x2d   :  { %v172_v21 = vadd.f32 %v164_v7, %v146_v55  ;;  %v173_v22 = vadd.f32 %v165_v8, %v147_v56  ;;  %v174_v23 = vadd.f32 %v166_v9, %v148_v57  ;;  %v175_v24 = vadd.f32 %v167_v10, %v149_v61  ;;  %v233_v7 = vld [vmem:[%s1008_s0 + $0x58] sm:$0x1]  ;;  %v234_v8 = vld [vmem:[%s1008_s0 + $0x68] sm:$0x1] }
  0x2e   :  { %v186_v26 = vmul.f32 %v185_v63, %v176_v5  ;;  %v187_v27 = vmul.f32 %v185_v63, %v177_v6  ;;  %v188_v28 = vmul.f32 %v185_v63, %v178_v11  ;;  %v189_v29 = vmul.f32 %v185_v63, %v179_v12  ;;  %v235_v9 = vld [vmem:[%s1008_s0 + $0x78] sm:$0x1] }
  0x2f   :  { %v190_v31 = vmul.f32 %v185_v63, %v180_v13  ;;  %v191_v32 = vmul.f32 %v185_v63, %v181_v18  ;;  %v192_v33 = vmul.f32 %v185_v63, %v182_v19  ;;  %v193_v34 = vmul.f32 %v185_v63, %v183_v20  ;;  %v254_v18 = vld [vmem:[%s1008_s0 + $0x9] sm:$0x1]  ;;  %v255_v19 = vld [vmem:[%s1008_s0 + $0x19] sm:$0x1] }
  0x30   :  { %v194_v38 = vadd.f32 %v186_v26, %v168_v14  ;;  %v195_v39 = vadd.f32 %v187_v27, %v169_v15  ;;  %v196_v40 = vadd.f32 %v188_v28, %v170_v16  ;;  %v197_v41 = vadd.f32 %v189_v29, %v171_v17  ;;  %v258_v26 = vld [vmem:[%s1008_s0 + $0x49] sm:$0x1] }
  0x31   :  { %v198_v45 = vadd.f32 %v190_v31, %v172_v21  ;;  %v199_v46 = vadd.f32 %v191_v32, %v173_v22  ;;  %v200_v47 = vadd.f32 %v192_v33, %v174_v23  ;;  %v201_v48 = vadd.f32 %v193_v34, %v175_v24  ;;  %v256_v24 = vld [vmem:[%s1008_s0 + $0x29] sm:$0x1]  ;;  %v259_v31 = vld [vmem:[%s1008_s0 + $0x59] sm:$0x1] }
  0x32   :  { %v212_v49 = vmul.f32 %v211_v0, %v202_v25  ;;  %v213_v50 = vmul.f32 %v211_v0, %v203_v30  ;;  %v214_v51 = vmul.f32 %v211_v0, %v204_v35  ;;  %v215_v52 = vmul.f32 %v211_v0, %v205_v36  ;;  %v257_v25 = vld [vmem:[%s1008_s0 + $0x39] sm:$0x1]  ;;  %v260_v32 = vld [vmem:[%s1008_s0 + $0x69] sm:$0x1] }
  0x33   :  { %v216_v54 = vmul.f32 %v211_v0, %v206_v37  ;;  %v217_v55 = vmul.f32 %v211_v0, %v207_v42  ;;  %v218_v56 = vmul.f32 %v211_v0, %v208_v43  ;;  %v219_v57 = vmul.f32 %v211_v0, %v209_v44  ;;  %v230_v0 = vld [vmem:[%s1008_s0 + $0x28] sm:$0x1]  ;;  %v261_v33 = vld [vmem:[%s1008_s0 + $0x79] sm:$0x1]  ;;  %v280_v42 = vld [vmem:[%s1008_s0 + $0xa] sm:$0x1] }
  0x34   :  { %v220_v60 = vadd.f32 %v212_v49, %v194_v38  ;;  %v221_v61 = vadd.f32 %v213_v50, %v195_v39  ;;  %v222_v62 = vadd.f32 %v214_v51, %v196_v40  ;;  %v223_v63 = vadd.f32 %v215_v52, %v197_v41  ;;  %v281_v43 = vld [vmem:[%s1008_s0 + $0x1a] sm:$0x1]  ;;  %v284_v50 = vld [vmem:[%s1008_s0 + $0x4a] sm:$0x1] }
  0x35   :  { %v224_v3 = vadd.f32 %v216_v54, %v198_v45  ;;  %v225_v4 = vadd.f32 %v217_v55, %v199_v46  ;;  %v226_v5 = vadd.f32 %v218_v56, %v200_v47  ;;  %v227_v6 = vadd.f32 %v219_v57, %v201_v48  ;;  %v282_v48 = vld [vmem:[%s1008_s0 + $0x2a] sm:$0x1]  ;;  %v283_v49 = vld [vmem:[%s1008_s0 + $0x3a] sm:$0x1] }
  0x36   :  { %v237_v10 = vstv %s730_s28  ;;  %v263_v11 = vstv %s732_s29  ;;  %v786_v12 = vstv %s737_s6  ;;  %v789_v13 = vstv %s739_s8  ;;  %s842_s29 = sld [smem:[#allocation3 + $0xc]]  ;;  %s844_s6 = sld [smem:[#allocation3 + $0xd]] }
  0x37   :  { %v238_v14 = vmul.f32 %v237_v10, %v228_v58  ;;  %v239_v15 = vmul.f32 %v237_v10, %v229_v59  ;;  %v240_v16 = vmul.f32 %v237_v10, %v230_v0  ;;  %v241_v17 = vmul.f32 %v237_v10, %v231_v1  ;;  %v285_v56 = vld [vmem:[%s1008_s0 + $0x5a] sm:$0x1]  ;;  %v286_v57 = vld [vmem:[%s1008_s0 + $0x6a] sm:$0x1] }
  0x38   :  { %v242_v20 = vmul.f32 %v237_v10, %v232_v2  ;;  %v243_v21 = vmul.f32 %v237_v10, %v233_v7  ;;  %v244_v22 = vmul.f32 %v237_v10, %v234_v8  ;;  %v245_v23 = vmul.f32 %v237_v10, %v235_v9  ;;  %v287_v58 = vld [vmem:[%s1008_s0 + $0x7a] sm:$0x1]  ;;  %v308_v9 = vld [vmem:[%s1008_s0 + $0x2b] sm:$0x1]  ;;  %v309_v10 = vld [vmem:[%s1008_s0 + $0x3b] sm:$0x1] }
  0x39   :  { %v246_v27 = vadd.f32 %v238_v14, %v220_v60  ;;  %v247_v28 = vadd.f32 %v239_v15, %v221_v61  ;;  %v248_v29 = vadd.f32 %v240_v16, %v222_v62  ;;  %v249_v30 = vadd.f32 %v241_v17, %v223_v63  ;;  %v306_v63 = vld [vmem:[%s1008_s0 + $0xb] sm:$0x1] }
  0x3a   :  { %v250_v34 = vadd.f32 %v242_v20, %v224_v3  ;;  %v251_v35 = vadd.f32 %v243_v21, %v225_v4  ;;  %v252_v36 = vadd.f32 %v244_v22, %v226_v5  ;;  %v253_v37 = vadd.f32 %v245_v23, %v227_v6  ;;  %v307_v4 = vld [vmem:[%s1008_s0 + $0x1b] sm:$0x1] }
  0x3b   :  { %v264_v38 = vmul.f32 %v263_v11, %v254_v18  ;;  %v265_v39 = vmul.f32 %v263_v11, %v255_v19  ;;  %v266_v40 = vmul.f32 %v263_v11, %v256_v24  ;;  %v267_v41 = vmul.f32 %v263_v11, %v257_v25  ;;  %v312_v18 = vld [vmem:[%s1008_s0 + $0x6b] sm:$0x1]  ;;  %v313_v19 = vld [vmem:[%s1008_s0 + $0x7b] sm:$0x1] }
  0x3c   :  { %v268_v44 = vmul.f32 %v263_v11, %v258_v26  ;;  %v269_v45 = vmul.f32 %v263_v11, %v259_v31  ;;  %v270_v46 = vmul.f32 %v263_v11, %v260_v32  ;;  %v271_v47 = vmul.f32 %v263_v11, %v261_v33  ;;  %v310_v11 = vld [vmem:[%s1008_s0 + $0x4b] sm:$0x1]  ;;  %v332_v32 = vld [vmem:[%s1008_s0 + $0xc] sm:$0x1]  ;;  %v333_v33 = vld [vmem:[%s1008_s0 + $0x1c] sm:$0x1] }
  0x3d   :  { %v272_v51 = vadd.f32 %v264_v38, %v246_v27  ;;  %v273_v52 = vadd.f32 %v265_v39, %v247_v28  ;;  %v274_v54 = vadd.f32 %v266_v40, %v248_v29  ;;  %v275_v55 = vadd.f32 %v267_v41, %v249_v30  ;;  %v335_v38 = vld [vmem:[%s1008_s0 + $0x3c] sm:$0x1]  ;;  %v336_v39 = vld [vmem:[%s1008_s0 + $0x4c] sm:$0x1] }
  0x3e   :  { %v276_v59 = vadd.f32 %v268_v44, %v250_v34  ;;  %v277_v60 = vadd.f32 %v269_v45, %v251_v35  ;;  %v278_v61 = vadd.f32 %v270_v46, %v252_v36  ;;  %v279_v62 = vadd.f32 %v271_v47, %v253_v37  ;;  %v337_v44 = vld [vmem:[%s1008_s0 + $0x5c] sm:$0x1]  ;;  %v338_v45 = vld [vmem:[%s1008_s0 + $0x6c] sm:$0x1] }
  0x3f   :  { %v290_v0 = vmul.f32 %v786_v12, %v280_v42  ;;  %v291_v1 = vmul.f32 %v786_v12, %v281_v43  ;;  %v292_v2 = vmul.f32 %v786_v12, %v282_v48  ;;  %v293_v3 = vmul.f32 %v786_v12, %v283_v49  ;;  %v339_v46 = vld [vmem:[%s1008_s0 + $0x7c] sm:$0x1] }
  0x40   :  { %v294_v5 = vmul.f32 %v786_v12, %v284_v50  ;;  %v295_v6 = vmul.f32 %v786_v12, %v285_v56  ;;  %v296_v7 = vmul.f32 %v786_v12, %v286_v57  ;;  %v297_v8 = vmul.f32 %v786_v12, %v287_v58  ;;  %v311_v12 = vld [vmem:[%s1008_s0 + $0x5b] sm:$0x1]  ;;  %v358_v56 = vld [vmem:[%s1008_s0 + $0xd] sm:$0x1]  ;;  %v359_v57 = vld [vmem:[%s1008_s0 + $0x1d] sm:$0x1] }
  0x41   :  { %v298_v14 = vadd.f32 %v290_v0, %v272_v51  ;;  %v299_v15 = vadd.f32 %v291_v1, %v273_v52  ;;  %v300_v16 = vadd.f32 %v292_v2, %v274_v54  ;;  %v301_v17 = vadd.f32 %v293_v3, %v275_v55  ;;  %v362_v0 = vld [vmem:[%s1008_s0 + $0x4d] sm:$0x1] }
  0x42   :  { %v302_v20 = vadd.f32 %v294_v5, %v276_v59  ;;  %v303_v21 = vadd.f32 %v295_v6, %v277_v60  ;;  %v304_v22 = vadd.f32 %v296_v7, %v278_v61  ;;  %v305_v23 = vadd.f32 %v297_v8, %v279_v62  ;;  %v360_v62 = vld [vmem:[%s1008_s0 + $0x2d] sm:$0x1]  ;;  %v363_v5 = vld [vmem:[%s1008_s0 + $0x5d] sm:$0x1] }
  0x43   :  { %v316_v24 = vmul.f32 %v789_v13, %v306_v63  ;;  %v317_v25 = vmul.f32 %v789_v13, %v307_v4  ;;  %v318_v26 = vmul.f32 %v789_v13, %v308_v9  ;;  %v319_v27 = vmul.f32 %v789_v13, %v309_v10  ;;  %v361_v63 = vld [vmem:[%s1008_s0 + $0x3d] sm:$0x1]  ;;  %v364_v6 = vld [vmem:[%s1008_s0 + $0x6d] sm:$0x1] }
  0x44   :  { %v320_v28 = vmul.f32 %v789_v13, %v310_v11  ;;  %v321_v29 = vmul.f32 %v789_v13, %v311_v12  ;;  %v322_v30 = vmul.f32 %v789_v13, %v312_v18  ;;  %v323_v31 = vmul.f32 %v789_v13, %v313_v19  ;;  %v334_v13 = vld [vmem:[%s1008_s0 + $0x2c] sm:$0x1]  ;;  %v365_v7 = vld [vmem:[%s1008_s0 + $0x7d] sm:$0x1]  ;;  %v384_v12 = vld [vmem:[%s1008_s0 + $0xe] sm:$0x1] }
  0x45   :  { %v324_v34 = vadd.f32 %v316_v24, %v298_v14  ;;  %v325_v35 = vadd.f32 %v317_v25, %v299_v15  ;;  %v326_v36 = vadd.f32 %v318_v26, %v300_v16  ;;  %v327_v37 = vadd.f32 %v319_v27, %v301_v17  ;;  %v385_v18 = vld [vmem:[%s1008_s0 + $0x1e] sm:$0x1]  ;;  %v388_v25 = vld [vmem:[%s1008_s0 + $0x4e] sm:$0x1] }
  0x46   :  { %v328_v40 = vadd.f32 %v320_v28, %v302_v20  ;;  %v329_v41 = vadd.f32 %v321_v29, %v303_v21  ;;  %v330_v42 = vadd.f32 %v322_v30, %v304_v22  ;;  %v331_v43 = vadd.f32 %v323_v31, %v305_v23  ;;  %v386_v23 = vld [vmem:[%s1008_s0 + $0x2e] sm:$0x1]  ;;  %v387_v24 = vld [vmem:[%s1008_s0 + $0x3e] sm:$0x1] }
  0x47   :  { %v341_v47 = vstv %s842_s29  ;;  %v367_v48 = vstv %s844_s6  ;;  %v393_v49 = vstv %s853_s17  ;;  %v915_v50 = vstv %s855_s18 }
  0x48   :  { %v342_v51 = vmul.f32 %v341_v47, %v332_v32  ;;  %v343_v52 = vmul.f32 %v341_v47, %v333_v33  ;;  %v344_v54 = vmul.f32 %v341_v47, %v334_v13  ;;  %v345_v55 = vmul.f32 %v341_v47, %v335_v38  ;;  %v389_v30 = vld [vmem:[%s1008_s0 + $0x5e] sm:$0x1]  ;;  %v390_v31 = vld [vmem:[%s1008_s0 + $0x6e] sm:$0x1] }
  0x49   :  { %v346_v58 = vmul.f32 %v341_v47, %v336_v39  ;;  %v347_v59 = vmul.f32 %v341_v47, %v337_v44  ;;  %v348_v60 = vmul.f32 %v341_v47, %v338_v45  ;;  %v349_v61 = vmul.f32 %v341_v47, %v339_v46  ;;  %v391_v32 = vld [vmem:[%s1008_s0 + $0x7e] sm:$0x1]  ;;  %v412_v46 = vld [vmem:[%s1008_s0 + $0x2f] sm:$0x1]  ;;  %v413_v47 = vld [vmem:[%s1008_s0 + $0x3f] sm:$0x1] }
  0x4a   :  { %v350_v1 = vadd.f32 %v342_v51, %v324_v34  ;;  %v351_v2 = vadd.f32 %v343_v52, %v325_v35  ;;  %v352_v3 = vadd.f32 %v344_v54, %v326_v36  ;;  %v353_v4 = vadd.f32 %v345_v55, %v327_v37 }
  0x4b   :  { %v354_v8 = vadd.f32 %v346_v58, %v328_v40  ;;  %v355_v9 = vadd.f32 %v347_v59, %v329_v41  ;;  %v356_v10 = vadd.f32 %v348_v60, %v330_v42  ;;  %v357_v11 = vadd.f32 %v349_v61, %v331_v43  ;;  %v410_v40 = vld [vmem:[%s1008_s0 + $0xf] sm:$0x1]  ;;  %v411_v41 = vld [vmem:[%s1008_s0 + $0x1f] sm:$0x1] }
  0x4c   :  { %v368_v14 = vmul.f32 %v367_v48, %v358_v56  ;;  %v369_v15 = vmul.f32 %v367_v48, %v359_v57  ;;  %v370_v16 = vmul.f32 %v367_v48, %v360_v62  ;;  %v371_v17 = vmul.f32 %v367_v48, %v361_v63  ;;  %v416_v56 = vld [vmem:[%s1008_s0 + $0x6f] sm:$0x1]  ;;  %v417_v57 = vld [vmem:[%s1008_s0 + $0x7f] sm:$0x1] }
  0x4d   :  { %v372_v19 = vmul.f32 %v367_v48, %v362_v0  ;;  %v373_v20 = vmul.f32 %v367_v48, %v363_v5  ;;  %v374_v21 = vmul.f32 %v367_v48, %v364_v6  ;;  %v375_v22 = vmul.f32 %v367_v48, %v365_v7  ;;  %v414_v48 = vld [vmem:[%s1008_s0 + $0x4f] sm:$0x1] }
  0x4e   :  { %v376_v26 = vadd.f32 %v368_v14, %v350_v1  ;;  %v377_v27 = vadd.f32 %v369_v15, %v351_v2  ;;  %v378_v28 = vadd.f32 %v370_v16, %v352_v3  ;;  %v379_v29 = vadd.f32 %v371_v17, %v353_v4 }
  0x4f   :  { %v380_v33 = vadd.f32 %v372_v19, %v354_v8  ;;  %v381_v34 = vadd.f32 %v373_v20, %v355_v9  ;;  %v382_v35 = vadd.f32 %v374_v21, %v356_v10  ;;  %v383_v36 = vadd.f32 %v375_v22, %v357_v11 }
  0x50   :  { %v394_v37 = vmul.f32 %v393_v49, %v384_v12  ;;  %v395_v13 = vmul.f32 %v393_v49, %v385_v18  ;;  %v396_v38 = vmul.f32 %v393_v49, %v386_v23  ;;  %v397_v39 = vmul.f32 %v393_v49, %v387_v24 }
  0x51   :  { %v398_v42 = vmul.f32 %v393_v49, %v388_v25  ;;  %v399_v43 = vmul.f32 %v393_v49, %v389_v30  ;;  %v400_v44 = vmul.f32 %v393_v49, %v390_v31  ;;  %v401_v45 = vmul.f32 %v393_v49, %v391_v32  ;;  %v415_v49 = vld [vmem:[%s1008_s0 + $0x5f] sm:$0x1] }
  0x52   :  { %v402_v51 = vadd.f32 %v394_v37, %v376_v26  ;;  %v403_v52 = vadd.f32 %v395_v13, %v377_v27  ;;  %v404_v54 = vadd.f32 %v396_v38, %v378_v28  ;;  %v405_v55 = vadd.f32 %v397_v39, %v379_v29 }
  0x53   :  { %v406_v58 = vadd.f32 %v398_v42, %v380_v33  ;;  %v407_v59 = vadd.f32 %v399_v43, %v381_v34  ;;  %v408_v60 = vadd.f32 %v400_v44, %v382_v35  ;;  %v409_v61 = vadd.f32 %v401_v45, %v383_v36 }
  0x54   :  { %v420_v62 = vmul.f32 %v915_v50, %v410_v40  ;;  %v421_v63 = vmul.f32 %v915_v50, %v411_v41  ;;  %v422_v0 = vmul.f32 %v915_v50, %v412_v46  ;;  %v423_v1 = vmul.f32 %v915_v50, %v413_v47 }
  0x55   :  { %v424_v2 = vmul.f32 %v915_v50, %v414_v48  ;;  %v425_v3 = vmul.f32 %v915_v50, %v415_v49  ;;  %v426_v4 = vmul.f32 %v915_v50, %v416_v56  ;;  %v427_v5 = vmul.f32 %v915_v50, %v417_v57 }
  0x56   :  { %v428_v6 = vadd.f32 %v420_v62, %v402_v51  ;;  %v429_v7 = vadd.f32 %v421_v63, %v403_v52  ;;  %v430_v8 = vadd.f32 %v422_v0, %v404_v54  ;;  %v431_v9 = vadd.f32 %v423_v1, %v405_v55 }
  0x57   :  { %v432_v10 = vadd.f32 %v424_v2, %v406_v58  ;;  %v433_v11 = vadd.f32 %v425_v3, %v407_v59  ;;  %v434_v14 = vadd.f32 %v426_v4, %v408_v60  ;;  %v435_v15 = vadd.f32 %v427_v5, %v409_v61 }
  0x58   :  { %v438_v16 = vadd.f32 %v689_v53, %v428_v6  ;;  %v439_v17 = vadd.f32 %v689_v53, %v429_v7  ;;  %v440_v12 = vadd.f32 %v689_v53, %v430_v8  ;;  %v441_v18 = vadd.f32 %v689_v53, %v431_v9 }
  0x59   :  { %v442_v19 = vadd.f32 %v689_v53, %v432_v10  ;;  %v443_v50 = vadd.f32 %v689_v53, %v433_v11  ;;  %v444_v20 = vadd.f32 %v689_v53, %v434_v14  ;;  %v445_v21 = vadd.f32 %v689_v53, %v435_v15 }
  0x5a   :  { %v454_v22 = vrot.slane %v439_v17, 7  ;;  %v457_v23 = vrot.slane %v440_v12, 6  ;;  %vm458_vm1 = vcmask 1042434   ;;  %v460_v24 = vrot.slane %v441_v18, 5 }
  0x5b   :  { %vm461_vm2 = vcmask 1043459   ;;  %v463_v25 = vrot.slane %v442_v19, 4  ;;  %vm464_vm3 = vcmask 1044484   ;;  %v466_v27 = vrot.slane %v443_v50, 3 }
  0x5c   :  { %v456_v26 = vsel %vm455_vm0, %v454_v22, %v438_v16  ;;  %vm467_vm4 = vcmask 1045509   ;;  %v469_v29 = vrot.slane %v444_v20, 2  ;;  %vm470_vm5 = vcmask 1046534  }
  0x5d   :  { %v459_v28 = vsel %vm458_vm1, %v457_v23, %v456_v26  ;;  %v472_v31 = vrot.slane %v445_v21, 1  ;;  %vm473_vm6 = vcmask 1047559  }
  0x5e   :  { %v462_v30 = vsel %vm461_vm2, %v460_v24, %v459_v28 }
  0x5f   :  { %v465_v32 = vsel %vm464_vm3, %v463_v25, %v462_v30 }
  0x60   :  { %v468_v33 = vsel %vm467_vm4, %v466_v27, %v465_v32 }
  0x61   :  { %v471_v53 = vsel %vm470_vm5, %v469_v29, %v468_v33 }
  0x62   :  { %v474_v34 = vsel %vm473_vm6, %v472_v31, %v471_v53 }
  0x63   :  { %476 = vst [vmem:[%s1011_s3] sm:$0xff] %v474_v34 }
  0x64   :  { %481 = vsyncpa [#allocation4], 1 }

</bundles_post_ra>
